<compile_context>
chip_gen: v7x
topology: tpu7x:2x2x1
jax: 0.10.0
libtpu: 0.0.40
codegen_flags: <defaults>
</compile_context>

<pallas_src>
import functools
import math

import jax
import jax.numpy as jnp
from jax.experimental import pallas as pl
from jax.experimental.pallas import tpu as pltpu

_LANE = 128
_TILE_BYTES_TARGET = 8 * 1024 * 1024   # ~8 MiB tiles: step overhead negligible on all gens
_VMEM_LIMIT_BYTES = 48 * 1024 * 1024   # 4 x 8 MiB (in+out, double-buffered) + headroom, < v7x 64 MiB


def _scale_kernel(x_ref, s_ref, o_ref, *, offset):
    # learned / per-feature scale: broadcast the (1, tc) row over the (tm, tc) tile.
    y = x_ref[...] * s_ref[...]
    if offset != 0.0:                      # only 'paper' emits the VPU add
        y = y + offset
    o_ref[...] = y


def _scale_const_kernel(x_ref, o_ref, *, scale, offset):
    # fixed scale types: scalar-immediate multiply, no scale input stream.
    y = x_ref[...] * scale
    if offset != 0.0:
        y = y + offset
    o_ref[...] = y


def _fixed_scale_value(scale_type):
    pi = math.pi
    table = {
        "learned": 1.0 / (2.0 * pi),
        "/2pi": 1.0 / (2.0 * pi),
        "2pi": 2.0 * pi,
        "pi": pi,
        "/pi": 1.0 / pi,
        "paper": 1.0 / pi,
        "1": 1.0,
        "0.1": 0.1,
        "/3pi": 1.0 / (3.0 * pi),
        "/4pi": 1.0 / (4.0 * pi),
    }
    if scale_type not in table:
        raise ValueError(f"unknown scale_type: {scale_type}")
    return table[scale_type]


def make_scale_params(dim, scale_type="learned", dtype=jnp.float32):
    """Deterministic parameter init mirroring ScaleLayer.__init__."""
    return jnp.full((dim,), _fixed_scale_value(scale_type), dtype=dtype)


def scale_layer(x, scale=None, scale_type="learned", *, donate_x=False,
                tile_bytes=_TILE_BYTES_TARGET):
    """Apply ScaleLayer.forward with a Pallas TPU kernel.

    x:     (batch, dim)
    scale: (dim,) — only read when scale_type == 'learned' (otherwise baked in)
    """
    batch, dim = x.shape
    offset = -math.pi / 2.0 if scale_type == "paper" else 0.0
    use_const = scale_type != "learned"

    itemsize = jnp.dtype(x.dtype).itemsize
    sublane = max(8, 32 // itemsize)       # 8 for f32, 16 for bf16, 32 for int8/fp8

    # ---- lane-dense fold: free reshape of contiguous row-major data ----
    fold = 1
    if dim % _LANE != 0:
        f = math.lcm(dim, _LANE) // dim
        if batch % f == 0:
            fold = f
    rows, cols = batch // fold, dim * fold
    x2 = x.reshape(rows, cols)

    if not use_const:
        s2 = jnp.tile(scale.astype(x.dtype), fold).reshape(1, cols)

    # ---- column tile: only split very wide rows (keep 128-lane multiples) ----
    if cols % _LANE == 0 and cols * itemsize * sublane > tile_bytes:
        tc = max(_LANE, (tile_bytes // (sublane * itemsize)) // _LANE * _LANE)
    else:
        tc = cols          # last block dim == full array dim -> always legal (masked if ragged)

    # ---- row tile: largest sublane multiple with ~tile_bytes footprint ----
    tm = max(sublane, (tile_bytes // (tc * itemsize)) // sublane * sublane)
    if tm >= rows:
        tm = rows          # single full-extent tile (block dim == array dim -> legal)

    grid = (pl.cdiv(rows, tm), pl.cdiv(cols, tc))   # ragged tails handled by Pallas masked stores
    out_shape = jax.ShapeDtypeStruct((rows, cols), x.dtype)
    x_spec = pl.BlockSpec((tm, tc), lambda i, j: (i, j))
    cparams = pltpu.CompilerParams(
        dimension_semantics=("parallel", "parallel"),  # TODO(synk): pltpu.CORE_PARALLEL on v7x
        vmem_limit_bytes=_VMEM_LIMIT_BYTES,
    )
    alias = {0: 0} if donate_x else {}

    if use_const:
        kernel = functools.partial(
            _scale_const_kernel, scale=_fixed_scale_value(scale_type), offset=offset
        )
        out = pl.pallas_call(
            kernel,
            out_shape=out_shape,
            grid=grid,
            in_specs=[x_spec],
            out_specs=x_spec,
            input_output_aliases=alias,
            compiler_params=cparams,
        )(x2)
    else:
        kernel = functools.partial(_scale_kernel, offset=offset)
        s_spec = pl.BlockSpec((1, tc), lambda i, j: (0, j))
        out = pl.pallas_call(
            kernel,
            out_shape=out_shape,
            grid=grid,
            in_specs=[x_spec, s_spec],
            out_specs=x_spec,
            input_output_aliases=alias,
            compiler_params=cparams,
        )(x2, s2)

    # undo the lane-dense fold (free reshape); no padding to slice off
    return out.reshape(batch, dim)


if __name__ == "__main__":
    key = jax.random.PRNGKey(0)
    kx, ks = jax.random.split(key)
    ok = True

    # --- case 1: (batch=8, dim=32) -> lane-dense fold (4 rows per 128-lane row) ---
    x = jax.random.normal(kx, (8, 32), dtype=jnp.float32)
    learned_scale = (
        jax.random.normal(ks, (32,), dtype=jnp.float32) * 0.1 + 1.0 / (2.0 * math.pi)
    )
    out = scale_layer(x, learned_scale, "learned")
    jax.block_until_ready(out)
    ok = ok and bool(jnp.allclose(out, x * learned_scale, atol=1e-6, rtol=1e-6))

    # fixed scale types -> constant (scalar-immediate) path
    for st in ("2pi", "paper", "/3pi"):
        s = make_scale_params(32, st)
        o = scale_layer(x, s, st)
        jax.block_until_ready(o)
        ref = x * s + (-math.pi / 2.0 if st == "paper" else 0.0)
        ok = ok and bool(jnp.allclose(o, ref, atol=1e-6, rtol=1e-6))

    # --- case 2: ragged shape (batch=10, dim=100), no fold, full-extent block ---
    x2 = jax.random.normal(kx, (10, 100), dtype=jnp.float32)
    s2 = jax.random.normal(ks, (100,), dtype=jnp.float32) * 0.05 + 0.3
    o2 = scale_layer(x2, s2, "learned")
    jax.block_until_ready(o2)
    ok = ok and bool(jnp.allclose(o2, x2 * s2, atol=1e-6, rtol=1e-6))

    # --- case 3: force a 2-D multi-tile grid (row + column split) with a tiny tile ---
    x3 = jax.random.normal(kx, (64, 256), dtype=jnp.float32)
    s3 = jax.random.normal(ks, (256,), dtype=jnp.float32) * 0.05 + 0.2
    o3 = scale_layer(x3, s3, "learned", tile_bytes=4096)
    jax.block_until_ready(o3)
    ok = ok and bool(jnp.allclose(o3, x3 * s3, atol=1e-6, rtol=1e-6))

    # --- case 4: ragged row tail with multi-tile grid (masked last tile) ---
    x4 = jax.random.normal(kx, (20, 100), dtype=jnp.float32)
    s4 = jax.random.normal(ks, (100,), dtype=jnp.float32) * 0.05 + 0.4
    o4 = scale_layer(x4, s4, "learned", tile_bytes=4096)
    jax.block_until_ready(o4)
    ok = ok and bool(jnp.allclose(o4, x4 * s4, atol=1e-6, rtol=1e-6))

    # --- case 5: bf16 activations (dtype-aware sublane rounding) ---
    x5 = jax.random.normal(kx, (32, 64), dtype=jnp.bfloat16)
    s5 = (jax.random.normal(ks, (64,), dtype=jnp.float32) * 0.1 + 0.5).astype(jnp.bfloat16)
    o5 = scale_layer(x5, s5, "learned")
    jax.block_until_ready(o5)
    ok = ok and bool(jnp.allclose(o5, x5 * s5, atol=1e-2, rtol=1e-2))

    print("KERNEL_OK" if ok else "KERNEL_MISMATCH")
</pallas_src>

<mosaic_0001>
module attributes {stable_mosaic.version = 11 : i64} {
  func.func @_scale_kernel(%arg0: i32, %arg1: i32, %arg2: memref<2x128xf32, #tpu.memory_space<vmem>>, %arg3: memref<1x128xf32, #tpu.memory_space<vmem>>, %arg4: memref<2x128xf32, #tpu.memory_space<vmem>>) attributes {dimension_semantics = [#tpu.dimension_semantics<parallel>, #tpu.dimension_semantics<parallel>], iteration_bounds = array<i64: 1, 1>, scalar_prefetch = 0 : i64, scratch_operands = 0 : i64, tpu.core_type = #tpu.core_type<tc>, window_params = [{transform_indices = @transform_0, window_bounds = array<i64: 2, 128>}, {transform_indices = @transform_1, window_bounds = array<i64: 1, 128>}, {transform_indices = @transform_2, window_bounds = array<i64: 2, 128>}]} {
    %c0 = arith.constant 0 : index
    %c0_0 = arith.constant 0 : index
    %0 = vector.load %arg2[%c0, %c0_0] : memref<2x128xf32, #tpu.memory_space<vmem>>, vector<2x128xf32>
    %c0_1 = arith.constant 0 : index
    %c0_2 = arith.constant 0 : index
    %1 = vector.load %arg3[%c0_1, %c0_2] : memref<1x128xf32, #tpu.memory_space<vmem>>, vector<1x128xf32>
    %2 = vector.broadcast %1 : vector<1x128xf32> to vector<2x128xf32>
    %3 = arith.mulf %0, %2 : vector<2x128xf32>
    %c0_3 = arith.constant 0 : index
    %c0_4 = arith.constant 0 : index
    %4 = vector.load %arg4[%c0_3, %c0_4] : memref<2x128xf32, #tpu.memory_space<vmem>>, vector<2x128xf32>
    tpu.vector_store %arg4[%c0_3, %c0_4], %3 {strides = array<i32>} : memref<2x128xf32, #tpu.memory_space<vmem>>, vector<2x128xf32>,
    return
  }
  func.func @transform_0(%arg0: i32, %arg1: i32) -> (i32, i32) {
    %c0_i32 = arith.constant 0 : i32
    return %arg0, %arg1 : i32, i32
  }
  func.func @transform_1(%arg0: i32, %arg1: i32) -> (i32, i32) {
    %c0_i32 = arith.constant 0 : i32
    %c0_i32_0 = arith.constant 0 : i32
    return %c0_i32, %arg1 : i32, i32
  }
  func.func @transform_2(%arg0: i32, %arg1: i32) -> (i32, i32) {
    %c0_i32 = arith.constant 0 : i32
    return %arg0, %arg1 : i32, i32
  }
}

</mosaic_0001>

<bundles_post_ra>
// kernel: tpu_custom_call.1
= control target key start
LH: loop header
LB: loop body
LE: loop exit
PB: predicated region body
PF: predicated region fallthrough
CT: control target
= control target key end

     0   :  { %7 = vsyncpa [#allocation3], 0  ;;  %s144_s0 = inlined_call_operand.hbm [shape: f32[2,128], index: 0, kind: input, shape index: {}]   ;;  %s145_s1 = inlined_call_operand.vmem [shape: f32[1,128], index: 1, kind: input, shape index: {}]   ;;  %s146_s2 = inlined_call_operand.hbm [shape: f32[2,128], index: 2, kind: output, shape index: {}]  }
   0x1   :  { %8 = vsyncpa [#allocation4], 0  ;;  %s100_s9 = smov [#allocation2]   ;;  %s52_s13 = scalar_lea.hbm %s144_s0, 32 }
   0x2   :  { %s15_s10 = sshll.u32 %s100_s9, 4  ;;  %p53_p0 = scmp.ne.s32.totalorder %s144_s0, %s52_s13  ;;  %s16_s10 = int_to_ptr.vmem [resolvable:$true] %s15_s10 }
   0x3   :  { %p56_p1 = scmp.lt.u32.totalorder %s52_s13, %s144_s0 }
   0x5   :  { %p58_p2 = pnand %p56_p1, %p53_p0 }
   0x7   :  { %61 = shalt.err (!%p58_p2)
}
   0x8   :  { %s62_s18 = scalar_lea.vmem %s16_s10, 32  ;;  %p67_p4 = scmp.lt.s32.totalorder %s16_s10, %s16_s10 }
   0x9   :  { %p63_p3 = scmp.ne.s32.totalorder %s16_s10, %s62_s18  ;;  %p68_p5 = scmp.lt.s32.totalorder %s62_s18, %s62_s18 }
   0xb   :  { %p69_p6 = por %p68_p5, %p67_p4 }
   0xd   :  { %p70_p7 = pnand %p69_p6, %p63_p3 }
   0xf   :  { %73 = shalt.err (!%p70_p7)
}
  0x10   :  { %18 = dma.hbm_to_vmem [thread:$0]  %s144_s0, 32, %s16_s10, [#allocation3]  }
  0x11   :  { %96 = dma.done.wait [#allocation3], 32  }
  0x12   :  { %97 = vsyncadd [#allocation3], 4294967264  ;;  %s101_s21 = smov [#allocation5]   ;;  %v24_v0 = vld [vmem:[#allocation2] sm:$0x3] }
  0x13   :  { %s40_s22 = sshll.u32 %s101_s21, 4  ;;  %v49_v1 = vld [vmem:[%s145_s1] ss:$0 sm:$0xff]  ;;  %s41_s22 = int_to_ptr.vmem [resolvable:$true] %s40_s22 }
  0x14   :  { %v32_v2 = vmul.f32 %v49_v1, %v24_v0  ;;  %s74_s25 = scalar_lea.vmem %s41_s22, 32  ;;  %p79_p9 = scmp.lt.s32.totalorder %s41_s22, %s41_s22 }
  0x15   :  { %p75_p8 = scmp.ne.s32.totalorder %s41_s22, %s74_s25  ;;  %p80_p10 = scmp.lt.s32.totalorder %s74_s25, %s74_s25 }
  0x16   :  { %33 = vst [vmem:[#allocation5] sm:$0x3] %v32_v2 }
  0x17   :  { %p81_p11 = por %p80_p10, %p79_p9 }
  0x19   :  { %p82_p12 = pnand %p81_p11, %p75_p8 }
  0x1b   :  { %85 = shalt.err (!%p82_p12)
}
  0x1c   :  { %s86_s27 = scalar_lea.hbm %s146_s2, 32 }
  0x1d   :  { %p87_p13 = scmp.ne.s32.totalorder %s146_s2, %s86_s27  ;;  %p90_p0 = scmp.lt.u32.totalorder %s86_s27, %s146_s2 }
  0x1f   :  { %p92_p1 = pnand %p90_p0, %p87_p13 }
  0x21   :  { %95 = shalt.err (!%p92_p1)
}
  0x22   :  { %43 = dma.vmem_to_hbm [thread:$0]  %s41_s22, 32, %s146_s2, [#allocation4]  }
  0x23   :  { %98 = dma.done.wait [#allocation4], 32  }
  0x24   :  { %99 = vsyncadd [#allocation4], 4294967264 }
  0x25   :  { %47 = vsyncpa [#allocation3], 1 }
  0x26   :  { %48 = vsyncpa [#allocation4], 1 }

</bundles_post_ra>
